<compile_context>
chip_gen: v7x
topology: tpu7x:2x2x1
jax: 0.10.0
libtpu: 0.0.40
codegen_flags: <defaults>
</compile_context>

<pallas_src>
import functools

import jax
import jax.numpy as jnp
from jax import lax
from jax.experimental import pallas as pl
from jax.experimental.pallas import tpu as pltpu
import numpy as np


def _ode_loss_moments_kernel(nrows_ref, x_ref, pred_ref, tgt_ref, c_ref,
                             mom_ref, *, analytic_nearest_index=False):
    """One (TB, N) batch block -> one lane-dense (1, 8, 128) moments block.

    Lane 0: sum_rows sum_n (pred - target)^2      (masked to valid rows)
    Lane 1: sum_rows f(c)       Lane 2: sum_rows f(c)^2
    Lane 3: sum_rows f'(c)      Lane 4: sum_rows f'(c)^2
    """
    TB, N = pred_ref.shape
    x = x_ref[...].astype(jnp.float32)                      # (1, N)
    c = c_ref[...]                                           # (TB, 1) f32

    # Uniform spacing taken from x itself (no host sync / closure constant).
    dxv = x[:, 1:2] - x[:, 0:1]                              # (1, 1)
    inv_dx = 1.0 / dxv

    # ---- sum of squared error per row (integral-term partial) -------------
    diff = pred_ref[...].astype(jnp.float32) - tgt_ref[...].astype(jnp.float32)
    row_sq = jnp.sum(diff * diff, axis=-1, keepdims=True)    # (TB, 1)

    # ---- nearest eval-point index per row ----------------------------------
    iota = lax.broadcasted_iota(jnp.int32, (TB, N), 1)       # (TB, N)
    if analytic_nearest_index:
        # Uniform-grid shortcut: avoids the (TB,N) |x-c| matrix + two lane
        # reductions.  Tie-breaking at exact midpoints may differ from
        # torch.argmin; enable only when that is acceptable.
        z = (c - x[:, 0:1]) * inv_dx
        idx = jnp.clip(jnp.floor(z + 0.5).astype(jnp.int32), 0, N - 1)
    else:
        dist = jnp.abs(x - c)                                # (TB, N)
        min_d = jnp.min(dist, axis=-1, keepdims=True)        # (TB, 1)
        idx = jnp.min(jnp.where(dist == min_d, iota, N),
                      axis=-1, keepdims=True)                # first argmin

    # ---- f(c): one-hot gather ----------------------------------------------
    fpc = jnp.sum(jnp.where(iota == idx,
                            pred_ref[...].astype(jnp.float32), 0.0),
                  axis=-1, keepdims=True)                    # (TB, 1)

    # ---- fused +/-1 neighbor gather for the central difference -------------
    sgn = (jnp.where(iota == idx + 1, 1.0, 0.0)
           - jnp.where(iota == idx - 1, 1.0, 0.0))
    central = jnp.sum(pred_ref[...].astype(jnp.float32) * sgn,
                      axis=-1, keepdims=True) * (0.5 * inv_dx)
    fwd = (pred_ref[:, 1:2].astype(jnp.float32)
           - pred_ref[:, 0:1].astype(jnp.float32)) * inv_dx          # idx == 0
    bwd = (pred_ref[:, N - 1:N].astype(jnp.float32)
           - pred_ref[:, N - 2:N - 1].astype(jnp.float32)) * inv_dx  # idx == N-1
    fpp = jnp.where(idx == 0, fwd, jnp.where(idx == N - 1, bwd, central))

    # ---- mask padded rows and reduce to per-step scalar moments ------------
    row0 = pl.program_id(0) * TB
    rows = lax.broadcasted_iota(jnp.int32, (TB, 1), 0) + row0
    maskf = (rows < nrows_ref[0]).astype(jnp.float32)        # (TB, 1)
    fpc_m = fpc * maskf
    fpp_m = fpp * maskf
    m0 = jnp.sum(row_sq * maskf)
    m1 = jnp.sum(fpc_m)
    m2 = jnp.sum(fpc_m * fpc)
    m3 = jnp.sum(fpp_m)
    m4 = jnp.sum(fpp_m * fpp)

    # Lane-dense (1, 8, 128) store: full sublane/lane extent -> unmasked vst.
    lane = lax.broadcasted_iota(jnp.int32, mom_ref.shape, 2)
    mom_ref[...] = (jnp.where(lane == 0, m0, 0.0)
                    + jnp.where(lane == 1, m1, 0.0)
                    + jnp.where(lane == 2, m2, 0.0)
                    + jnp.where(lane == 3, m3, 0.0)
                    + jnp.where(lane == 4, m4, 0.0))


def custom_ode_loss(pred, target, c_input, x_eval_points,
                    alpha, beta, y0_fixed_at_c, y_prime0_fixed_at_c,
                    *, block_rows=None, analytic_nearest_index=False):
    """pred, target: (B, N); c_input: (B,); x_eval_points: (N,). Returns scalar f32."""
    pred = jnp.asarray(pred)
    target = jnp.asarray(target)
    c_input = jnp.asarray(c_input, jnp.float32)
    x_eval = jnp.asarray(x_eval_points, jnp.float32)
    B, N = pred.shape

    alpha = jnp.float32(alpha)
    beta = jnp.float32(beta)
    y0 = jnp.float32(y0_fixed_at_c)
    yp0 = jnp.float32(y_prime0_fixed_at_c)

    if N == 1:
        # PyTorch degenerate branch: dx falls back to 1.0 and f'(c) = 0.
        p32 = pred.astype(jnp.float32)
        t32 = target.astype(jnp.float32)
        integral = jnp.mean((p32 - t32) ** 2)
        term2 = alpha * jnp.mean((p32[:, 0] - y0) ** 2)
        term3 = beta * (yp0 * yp0)            # mean((0 - yp0)^2) over batch
        return integral + term2 + term3

    # ---- generation-aware tile / VMEM budgets -------------------------------
    try:
        vmem_cap = pltpu.get_tpu_info().vmem_capacity_bytes
    except Exception:
        vmem_cap = 64 * 1024 * 1024           # conservative (v7x-class) fallback
    small_vmem = vmem_cap <= 80 * 1024 * 1024  # v7x: 64 MiB per TensorCore
    if small_vmem:
        per_buffer_bytes = 2 * 1024 * 1024    # keep total footprint ~<32 MiB/TC
        vmem_limit = 40 * 1024 * 1024
        n_buffers = 2
    else:
        per_buffer_bytes = 4 * 1024 * 1024    # v5e/v6e: 128 MiB physical VMEM
        vmem_limit = 64 * 1024 * 1024
        n_buffers = 3

    itemsize = max(jnp.dtype(pred.dtype).itemsize,
                   jnp.dtype(target.dtype).itemsize)
    bp8 = ((B + 7) // 8) * 8
    if block_rows is None:
        block_rows = max(8, (per_buffer_bytes // (itemsize * N)) // 8 * 8)
    TB = max(8, (min(block_rows, bp8) // 8) * 8)
    # Guarantee >= 2 grid steps when the batch allows so the ("parallel",)
    # axis gives both v7x TensorCores work (costless on single-core chips).
    if bp8 >= 16:
        TB = min(TB, ((bp8 // 2 + 7) // 8) * 8)
    Bp = ((B + TB - 1) // TB) * TB
    G = Bp // TB

    # ---- pad batch to the tile grid (padded rows masked in-kernel) ----------
    pad = Bp - B
    c2d = jnp.reshape(c_input, (B, 1))
    if pad:
        pred_p = jnp.pad(pred, ((0, pad), (0, 0)))
        target_p = jnp.pad(target, ((0, pad), (0, 0)))
        c2d = jnp.pad(c2d, ((0, pad), (0, 0)))
    else:
        pred_p, target_p = pred, target
    x2d = jnp.reshape(x_eval, (1, N))
    nrows = jnp.array([B], dtype=jnp.int32)   # scalar-prefetched into SMEM

    stream_kwargs = {}
    if n_buffers != 2 and G >= 4:
        stream_kwargs = dict(pipeline_mode=pl.Buffered(n_buffers))
    stream_spec = pl.BlockSpec((TB, N), lambda i, n: (i, 0), **stream_kwargs)

    kernel = functools.partial(_ode_loss_moments_kernel,
                               analytic_nearest_index=analytic_nearest_index)

    moments = pl.pallas_call(
        kernel,
        out_shape=jax.ShapeDtypeStruct((G, 8, 128), jnp.float32),
        grid_spec=pltpu.PrefetchScalarGridSpec(
            num_scalar_prefetch=1,
            grid=(G,),
            in_specs=[
                pl.BlockSpec((1, N), lambda i, n: (0, 0)),   # x_eval (shared)
                stream_spec,                                  # pred   (streamed)
                stream_spec,                                  # target (streamed)
                pl.BlockSpec((TB, 1), lambda i, n: (i, 0)),   # c
            ],
            out_specs=pl.BlockSpec((1, 8, 128), lambda i, n: (i, 0, 0)),
        ),
        compiler_params=pltpu.CompilerParams(
            dimension_semantics=("parallel",),   # independent blocks -> megacore
            vmem_limit_bytes=vmem_limit,
        ),
    )(nrows, x2d, pred_p, target_p, c2d)

    # ---- combine moments with alpha/beta/y0/yp0 in plain JAX ----------------
    sums = jnp.sum(moments[:, 0, :8], axis=0)   # (8,) ; lanes 5..7 are zero
    s_sq, s_fpc, s_fpc2, s_fpp, s_fpp2 = (sums[0], sums[1], sums[2],
                                          sums[3], sums[4])
    Bf = jnp.float32(B)
    integral = s_sq / (Bf * jnp.float32(N))
    term2 = alpha * (s_fpc2 - 2.0 * y0 * s_fpc + Bf * y0 * y0) / Bf
    term3 = beta * (s_fpp2 - 2.0 * yp0 * s_fpp + Bf * yp0 * yp0) / Bf
    return integral + term2 + term3


def _reference_numpy(pred, target, c_input, x_eval, alpha, beta, y0, yp0):
    pred = np.asarray(pred, np.float32)
    target = np.asarray(target, np.float32)
    c_input = np.asarray(c_input, np.float32)
    x_eval = np.asarray(x_eval, np.float32)
    dx = x_eval[1] - x_eval[0] if x_eval.shape[0] > 1 else np.float32(1.0)
    integral = np.mean((pred - target) ** 2)
    fpc, fppc = [], []
    for i in range(c_input.shape[0]):
        cv = c_input[i]
        sol = pred[i]
        idx = int(np.argmin(np.abs(x_eval - cv)))
        fpc.append(sol[idx])
        if idx == 0:
            fppc.append((sol[1] - sol[0]) / dx if sol.shape[0] > 1 else 0.0)
        elif idx == sol.shape[0] - 1:
            fppc.append((sol[-1] - sol[-2]) / dx)
        else:
            fppc.append((sol[idx + 1] - sol[idx - 1]) / (2 * dx))
    fpc = np.array(fpc, np.float32)
    fppc = np.array(fppc, np.float32)
    t2 = alpha * np.mean((fpc - y0) ** 2)
    t3 = beta * np.mean((fppc - yp0) ** 2)
    return np.float32(integral + t2 + t3)


if __name__ == "__main__":
    # Deterministic synthetic setup (constructor params + inputs).
    # B=24 with TB capped for >=2 grid steps exercises padding + row masking.
    B, N = 24, 128
    alpha, beta = 10.0, 5.0
    y0_fixed, yp0_fixed = 1.0, 0.0
    x_eval = np.linspace(0.0, 1.0, N).astype(np.float32)

    key = jax.random.PRNGKey(0)
    k1, k2, k3 = jax.random.split(key, 3)
    pred = jax.random.normal(k1, (B, N), dtype=jnp.float32)
    target = jax.random.normal(k2, (B, N), dtype=jnp.float32)
    c_input = jax.random.uniform(k3, (B,), dtype=jnp.float32,
                                 minval=0.0, maxval=1.0)

    loss = custom_ode_loss(pred, target, c_input, x_eval,
                           alpha, beta, y0_fixed, yp0_fixed)
    loss = jax.block_until_ready(loss)

    ref = _reference_numpy(pred, target, c_input, x_eval,
                           alpha, beta, y0_fixed, yp0_fixed)
    assert np.allclose(np.asarray(loss), ref, rtol=1e-4, atol=1e-4), (loss, ref)
    print("KERNEL_OK")
</pallas_src>

<mosaic_0001>
module attributes {stable_mosaic.version = 11 : i64} {
  func.func @_ode_loss_moments_kernel(%arg0: i32, %arg1: memref<1xi32, #tpu.memory_space<smem>>, %arg2: memref<1x128xf32, #tpu.memory_space<vmem>>, %arg3: memref<16x128xf32, #tpu.memory_space<vmem>>, %arg4: memref<16x128xf32, #tpu.memory_space<vmem>>, %arg5: memref<16x1xf32, #tpu.memory_space<vmem>>, %arg6: memref<1x8x128xf32, #tpu.memory_space<vmem>>) attributes {dimension_semantics = [#tpu.dimension_semantics<parallel>], iteration_bounds = array<i64: 2>, scalar_prefetch = 1 : i64, scratch_operands = 0 : i64, tpu.core_type = #tpu.core_type<tc>, window_params = [{pipeline_mode = #tpu.pipeline_mode<synchronous>, transform_indices = @transform_0, window_bounds = array<i64: 1, 128>}, {transform_indices = @transform_1, window_bounds = array<i64: 16, 128>}, {transform_indices = @transform_2, window_bounds = array<i64: 16, 128>}, {transform_indices = @transform_3, window_bounds = array<i64: 16, 1>}, {transform_indices = @transform_4, window_bounds = array<i64: 1, 8, 128>}]} {
    %c0 = arith.constant 0 : index
    %c0_0 = arith.constant 0 : index
    %0 = vector.load %arg2[%c0, %c0_0] : memref<1x128xf32, #tpu.memory_space<vmem>>, vector<1x128xf32>
    %c0_1 = arith.constant 0 : index
    %c0_2 = arith.constant 0 : index
    %1 = vector.load %arg5[%c0_1, %c0_2] : memref<16x1xf32, #tpu.memory_space<vmem>>, vector<16x1xf32>
    %2 = vector.extract_strided_slice %0 {offsets = [0, 1], sizes = [1, 1], strides = [1, 1]} : vector<1x128xf32> to vector<1x1xf32>
    %3 = vector.extract_strided_slice %0 {offsets = [0, 0], sizes = [1, 1], strides = [1, 1]} : vector<1x128xf32> to vector<1x1xf32>
    %4 = arith.subf %2, %3 : vector<1x1xf32>
    %cst = arith.constant 1.000000e+00 : f32
    %5 = vector.broadcast %cst : f32 to vector<1x1xf32>
    %6 = arith.divf %5, %4 : vector<1x1xf32>
    %c0_3 = arith.constant 0 : index
    %c0_4 = arith.constant 0 : index
    %7 = vector.load %arg3[%c0_3, %c0_4] : memref<16x128xf32, #tpu.memory_space<vmem>>, vector<16x128xf32>
    %c0_5 = arith.constant 0 : index
    %c0_6 = arith.constant 0 : index
    %8 = vector.load %arg4[%c0_5, %c0_6] : memref<16x128xf32, #tpu.memory_space<vmem>>, vector<16x128xf32>
    %9 = arith.subf %7, %8 : vector<16x128xf32>
    %10 = arith.mulf %9, %9 : vector<16x128xf32>
    %cst_7 = arith.constant dense<0.000000e+00> : vector<16xf32>
    %11 = vector.multi_reduction <add>, %10, %cst_7 [1] : vector<16x128xf32> to vector<16xf32>
    %12 = vector.shape_cast %11 : vector<16xf32> to vector<16x1xf32>
    %13 = tpu.iota {dimensions = array<i32: 1>} : vector<16x128xi32>
    %14 = vector.broadcast %0 : vector<1x128xf32> to vector<16x128xf32>
    %15 = vector.broadcast %1 : vector<16x1xf32> to vector<16x128xf32>
    %16 = arith.subf %14, %15 : vector<16x128xf32>
    %17 = math.absf %16 : vector<16x128xf32>
    %cst_8 = arith.constant dense<0x7F800000> : vector<16xf32>
    %18 = vector.multi_reduction <minimumf>, %17, %cst_8 [1] : vector<16x128xf32> to vector<16xf32>
    %19 = vector.shape_cast %18 : vector<16xf32> to vector<16x1xf32>
    %20 = vector.broadcast %19 : vector<16x1xf32> to vector<16x128xf32>
    %21 = arith.cmpf oeq, %17, %20 : vector<16x128xf32>
    %c128_i32 = arith.constant 128 : i32
    %22 = vector.broadcast %c128_i32 : i32 to vector<16x128xi32>
    %23 = arith.select %21, %13, %22 : vector<16x128xi1>, vector<16x128xi32>
    %cst_9 = arith.constant dense<2147483647> : vector<16xi32>
    %24 = vector.multi_reduction <minsi>, %23, %cst_9 [1] : vector<16x128xi32> to vector<16xi32>
    %25 = vector.shape_cast %24 : vector<16xi32> to vector<16x1xi32>
    %26 = vector.broadcast %25 : vector<16x1xi32> to vector<16x128xi32>
    %27 = arith.cmpi eq, %13, %26 : vector<16x128xi32>
    %c0_10 = arith.constant 0 : index
    %c0_11 = arith.constant 0 : index
    %28 = vector.load %arg3[%c0_10, %c0_11] : memref<16x128xf32, #tpu.memory_space<vmem>>, vector<16x128xf32>
    %cst_12 = arith.constant 0.000000e+00 : f32
    %29 = vector.broadcast %cst_12 : f32 to vector<16x128xf32>
    %30 = arith.select %27, %28, %29 : vector<16x128xi1>, vector<16x128xf32>
    %cst_13 = arith.constant dense<0.000000e+00> : vector<16xf32>
    %31 = vector.multi_reduction <add>, %30, %cst_13 [1] : vector<16x128xf32> to vector<16xf32>
    %32 = vector.shape_cast %31 : vector<16xf32> to vector<16x1xf32>
    %c1_i32 = arith.constant 1 : i32
    %33 = vector.broadcast %c1_i32 : i32 to vector<16x1xi32>
    %34 = arith.addi %25, %33 : vector<16x1xi32>
    %35 = vector.broadcast %34 : vector<16x1xi32> to vector<16x128xi32>
    %36 = arith.cmpi eq, %13, %35 : vector<16x128xi32>
    %cst_14 = arith.constant 1.000000e+00 : f32
    %cst_15 = arith.constant 0.000000e+00 : f32
    %37 = vector.broadcast %cst_14 : f32 to vector<16x128xf32>
    %38 = vector.broadcast %cst_15 : f32 to vector<16x128xf32>
    %39 = arith.select %36, %37, %38 : vector<16x128xi1>, vector<16x128xf32>
    %c1_i32_16 = arith.constant 1 : i32
    %40 = vector.broadcast %c1_i32_16 : i32 to vector<16x1xi32>
    %41 = arith.subi %25, %40 : vector<16x1xi32>
    %42 = vector.broadcast %41 : vector<16x1xi32> to vector<16x128xi32>
    %43 = arith.cmpi eq, %13, %42 : vector<16x128xi32>
    %cst_17 = arith.constant 1.000000e+00 : f32
    %cst_18 = arith.constant 0.000000e+00 : f32
    %44 = vector.broadcast %cst_17 : f32 to vector<16x128xf32>
    %45 = vector.broadcast %cst_18 : f32 to vector<16x128xf32>
    %46 = arith.select %43, %44, %45 : vector<16x128xi1>, vector<16x128xf32>
    %47 = arith.subf %39, %46 : vector<16x128xf32>
    %c0_19 = arith.constant 0 : index
    %c0_20 = arith.constant 0 : index
    %48 = vector.load %arg3[%c0_19, %c0_20] : memref<16x128xf32, #tpu.memory_space<vmem>>, vector<16x128xf32>
    %49 = arith.mulf %48, %47 : vector<16x128xf32>
    %cst_21 = arith.constant dense<0.000000e+00> : vector<16xf32>
    %50 = vector.multi_reduction <add>, %49, %cst_21 [1] : vector<16x128xf32> to vector<16xf32>
    %51 = vector.shape_cast %50 : vector<16xf32> to vector<16x1xf32>
    %cst_22 = arith.constant 5.000000e-01 : f32
    %52 = vector.broadcast %cst_22 : f32 to vector<1x1xf32>
    %53 = arith.mulf %52, %6 : vector<1x1xf32>
    %54 = vector.broadcast %53 : vector<1x1xf32> to vector<16x1xf32>
    %55 = arith.mulf %51, %54 : vector<16x1xf32>
    %c0_23 = arith.constant 0 : index
    %c1 = arith.constant 1 : index
    %56 = vector.load %arg3[%c0_23, %c1] : memref<16x128xf32, #tpu.memory_space<vmem>>, vector<16x1xf32>
    %c0_24 = arith.constant 0 : index
    %c0_25 = arith.constant 0 : index
    %57 = vector.load %arg3[%c0_24, %c0_25] : memref<16x128xf32, #tpu.memory_space<vmem>>, vector<16x1xf32>
    %58 = arith.subf %56, %57 : vector<16x1xf32>
    %59 = vector.broadcast %6 : vector<1x1xf32> to vector<16x1xf32>
    %60 = arith.mulf %58, %59 : vector<16x1xf32>
    %c0_26 = arith.constant 0 : index
    %c127 = arith.constant 127 : index
    %61 = vector.load %arg3[%c0_26, %c127] : memref<16x128xf32, #tpu.memory_space<vmem>>, vector<16x1xf32>
    %c0_27 = arith.constant 0 : index
    %c126 = arith.constant 126 : index
    %62 = vector.load %arg3[%c0_27, %c126] : memref<16x128xf32, #tpu.memory_space<vmem>>, vector<16x1xf32>
    %63 = arith.subf %61, %62 : vector<16x1xf32>
    %64 = vector.broadcast %6 : vector<1x1xf32> to vector<16x1xf32>
    %65 = arith.mulf %63, %64 : vector<16x1xf32>
    %c0_i32 = arith.constant 0 : i32
    %66 = vector.broadcast %c0_i32 : i32 to vector<16x1xi32>
    %67 = arith.cmpi eq, %25, %66 : vector<16x1xi32>
    %c127_i32 = arith.constant 127 : i32
    %68 = vector.broadcast %c127_i32 : i32 to vector<16x1xi32>
    %69 = arith.cmpi eq, %25, %68 : vector<16x1xi32>
    %70 = arith.select %69, %65, %55 : vector<16x1xi1>, vector<16x1xf32>
    %71 = arith.select %67, %60, %70 : vector<16x1xi1>, vector<16x1xf32>
    %c16_i32 = arith.constant 16 : i32
    %72 = arith.muli %arg0, %c16_i32 : i32
    %73 = tpu.iota {dimensions = array<i32: 0>} : vector<16x1xi32>
    %74 = vector.broadcast %72 : i32 to vector<16x1xi32>
    %75 = arith.addi %73, %74 : vector<16x1xi32>
    %c0_28 = arith.constant 0 : index
    %76 = memref.load %arg1[%c0_28] : memref<1xi32, #tpu.memory_space<smem>>
    %77 = vector.broadcast %76 : i32 to vector<16x1xi32>
    %78 = arith.cmpi slt, %75, %77 : vector<16x1xi32>
    %79 = arith.extui %78 : vector<16x1xi1> to vector<16x1xi32>
    %80 = arith.sitofp %79 : vector<16x1xi32> to vector<16x1xf32>
    %81 = arith.mulf %32, %80 : vector<16x1xf32>
    %82 = arith.mulf %71, %80 : vector<16x1xf32>
    %83 = arith.mulf %12, %80 : vector<16x1xf32>
    %84 = vector.shape_cast %83 : vector<16x1xf32> to vector<1x16x1xf32>
    %cst_29 = arith.constant dense<0.000000e+00> : vector<1xf32>
    %85 = vector.multi_reduction <add>, %84, %cst_29 [1, 2] : vector<1x16x1xf32> to vector<1xf32>
    %86 = vector.shape_cast %85 : vector<1xf32> to vector<1x1x1xf32>
    %87 = vector.extract %86[0, 0, 0] : f32 from vector<1x1x1xf32>
    %88 = vector.shape_cast %81 : vector<16x1xf32> to vector<1x16x1xf32>
    %cst_30 = arith.constant dense<0.000000e+00> : vector<1xf32>
    %89 = vector.multi_reduction <add>, %88, %cst_30 [1, 2] : vector<1x16x1xf32> to vector<1xf32>
    %90 = vector.shape_cast %89 : vector<1xf32> to vector<1x1x1xf32>
    %91 = vector.extract %90[0, 0, 0] : f32 from vector<1x1x1xf32>
    %92 = arith.mulf %81, %32 : vector<16x1xf32>
    %93 = vector.shape_cast %92 : vector<16x1xf32> to vector<1x16x1xf32>
    %cst_31 = arith.constant dense<0.000000e+00> : vector<1xf32>
    %94 = vector.multi_reduction <add>, %93, %cst_31 [1, 2] : vector<1x16x1xf32> to vector<1xf32>
    %95 = vector.shape_cast %94 : vector<1xf32> to vector<1x1x1xf32>
    %96 = vector.extract %95[0, 0, 0] : f32 from vector<1x1x1xf32>
    %97 = vector.shape_cast %82 : vector<16x1xf32> to vector<1x16x1xf32>
    %cst_32 = arith.constant dense<0.000000e+00> : vector<1xf32>
    %98 = vector.multi_reduction <add>, %97, %cst_32 [1, 2] : vector<1x16x1xf32> to vector<1xf32>
    %99 = vector.shape_cast %98 : vector<1xf32> to vector<1x1x1xf32>
    %100 = vector.extract %99[0, 0, 0] : f32 from vector<1x1x1xf32>
    %101 = arith.mulf %82, %71 : vector<16x1xf32>
    %102 = vector.shape_cast %101 : vector<16x1xf32> to vector<1x16x1xf32>
    %cst_33 = arith.constant dense<0.000000e+00> : vector<1xf32>
    %103 = vector.multi_reduction <add>, %102, %cst_33 [1, 2] : vector<1x16x1xf32> to vector<1xf32>
    %104 = vector.shape_cast %103 : vector<1xf32> to vector<1x1x1xf32>
    %105 = vector.extract %104[0, 0, 0] : f32 from vector<1x1x1xf32>
    %106 = tpu.iota {dimensions = array<i32: 2>} : vector<1x8x128xi32>
    %c0_i32_34 = arith.constant 0 : i32
    %107 = vector.broadcast %c0_i32_34 : i32 to vector<1x8x128xi32>
    %108 = arith.cmpi eq, %106, %107 : vector<1x8x128xi32>
    %cst_35 = arith.constant 0.000000e+00 : f32
    %109 = vector.broadcast %87 : f32 to vector<1x8x128xf32>
    %110 = vector.broadcast %cst_35 : f32 to vector<1x8x128xf32>
    %111 = arith.select %108, %109, %110 : vector<1x8x128xi1>, vector<1x8x128xf32>
    %c1_i32_36 = arith.constant 1 : i32
    %112 = vector.broadcast %c1_i32_36 : i32 to vector<1x8x128xi32>
    %113 = arith.cmpi eq, %106, %112 : vector<1x8x128xi32>
    %cst_37 = arith.constant 0.000000e+00 : f32
    %114 = vector.broadcast %91 : f32 to vector<1x8x128xf32>
    %115 = vector.broadcast %cst_37 : f32 to vector<1x8x128xf32>
    %116 = arith.select %113, %114, %115 : vector<1x8x128xi1>, vector<1x8x128xf32>
    %117 = arith.addf %111, %116 : vector<1x8x128xf32>
    %c2_i32 = arith.constant 2 : i32
    %118 = vector.broadcast %c2_i32 : i32 to vector<1x8x128xi32>
    %119 = arith.cmpi eq, %106, %118 : vector<1x8x128xi32>
    %cst_38 = arith.constant 0.000000e+00 : f32
    %120 = vector.broadcast %96 : f32 to vector<1x8x128xf32>
    %121 = vector.broadcast %cst_38 : f32 to vector<1x8x128xf32>
    %122 = arith.select %119, %120, %121 : vector<1x8x128xi1>, vector<1x8x128xf32>
    %123 = arith.addf %117, %122 : vector<1x8x128xf32>
    %c3_i32 = arith.constant 3 : i32
    %124 = vector.broadcast %c3_i32 : i32 to vector<1x8x128xi32>
    %125 = arith.cmpi eq, %106, %124 : vector<1x8x128xi32>
    %cst_39 = arith.constant 0.000000e+00 : f32
    %126 = vector.broadcast %100 : f32 to vector<1x8x128xf32>
    %127 = vector.broadcast %cst_39 : f32 to vector<1x8x128xf32>
    %128 = arith.select %125, %126, %127 : vector<1x8x128xi1>, vector<1x8x128xf32>
    %129 = arith.addf %123, %128 : vector<1x8x128xf32>
    %c4_i32 = arith.constant 4 : i32
    %130 = vector.broadcast %c4_i32 : i32 to vector<1x8x128xi32>
    %131 = arith.cmpi eq, %106, %130 : vector<1x8x128xi32>
    %cst_40 = arith.constant 0.000000e+00 : f32
    %132 = vector.broadcast %105 : f32 to vector<1x8x128xf32>
    %133 = vector.broadcast %cst_40 : f32 to vector<1x8x128xf32>
    %134 = arith.select %131, %132, %133 : vector<1x8x128xi1>, vector<1x8x128xf32>
    %135 = arith.addf %129, %134 : vector<1x8x128xf32>
    %c0_41 = arith.constant 0 : index
    %c0_42 = arith.constant 0 : index
    %c0_43 = arith.constant 0 : index
    %136 = vector.load %arg6[%c0_41, %c0_42, %c0_43] : memref<1x8x128xf32, #tpu.memory_space<vmem>>, vector<1x8x128xf32>
    tpu.vector_store %arg6[%c0_41, %c0_42, %c0_43], %135 {strides = array<i32>} : memref<1x8x128xf32, #tpu.memory_space<vmem>>, vector<1x8x128xf32>,
    return
  }
  func.func @transform_0(%arg0: i32, %arg1: memref<1xi32, #tpu.memory_space<smem>>) -> (i32, i32) {
    %c0_i32 = arith.constant 0 : i32
    %c0_i32_0 = arith.constant 0 : i32
    %c0_i32_1 = arith.constant 0 : i32
    return %c0_i32, %c0_i32_0 : i32, i32
  }
  func.func @transform_1(%arg0: i32, %arg1: memref<1xi32, #tpu.memory_space<smem>>) -> (i32, i32) {
    %c0_i32 = arith.constant 0 : i32
    %c0_i32_0 = arith.constant 0 : i32
    return %arg0, %c0_i32 : i32, i32
  }
  func.func @transform_2(%arg0: i32, %arg1: memref<1xi32, #tpu.memory_space<smem>>) -> (i32, i32) {
    %c0_i32 = arith.constant 0 : i32
    %c0_i32_0 = arith.constant 0 : i32
    return %arg0, %c0_i32 : i32, i32
  }
  func.func @transform_3(%arg0: i32, %arg1: memref<1xi32, #tpu.memory_space<smem>>) -> (i32, i32) {
    %c0_i32 = arith.constant 0 : i32
    %c0_i32_0 = arith.constant 0 : i32
    return %arg0, %c0_i32 : i32, i32
  }
  func.func @transform_4(%arg0: i32, %arg1: memref<1xi32, #tpu.memory_space<smem>>) -> (i32, i32, i32) {
    %c0_i32 = arith.constant 0 : i32
    %c0_i32_0 = arith.constant 0 : i32
    %c0_i32_1 = arith.constant 0 : i32
    return %arg0, %c0_i32, %c0_i32_0 : i32, i32, i32
  }
}

</mosaic_0001>

<bundles_post_ra>
// kernel: tpu_custom_call.1
= control target key start
LH: loop header
LB: loop body
LE: loop exit
PB: predicated region body
PF: predicated region fallthrough
CT: control target
= control target key end

     0   :  { %s1133_s0 = inlined_call_operand.<no memory space> [shape: s32[1], index: 0, kind: input, shape index: {}]   ;;  %s1134_s1 = inlined_call_operand.vmem [shape: f32[1,128], index: 1, kind: input, shape index: {}]   ;;  %s1135_s2 = inlined_call_operand.vmem [shape: f32[32,128], index: 2, kind: input, shape index: {}]   ;;  %s1136_s3 = inlined_call_operand.hbm [shape: f32[32,128], index: 3, kind: input, shape index: {}]   ;;  %s1137_s4 = inlined_call_operand.vmem [shape: f32[32,1], index: 4, kind: input, shape index: {}]   ;;  %s1138_s5 = inlined_call_operand.hbm [shape: f32[2,8,128], index: 5, kind: output, shape index: {}]  }
   0x1   :  { %10 = sst [smem:[#allocation3]] %s1133_s0 }
   0x2   :  { %11 = vsyncpa [#allocation5], 0 }
   0x3   :  { %13 = vsyncpa [#allocation5 + $0x1], 0 }
   0x4   :  { %14 = vsyncpa [#allocation6], 0 }
   0x5   :  { %16 = vsyncpa [#allocation6 + $0x1], 0  ;;  %s887_s20 = smov 0   ;;  %s889_s21 = smov 0  }
   0x6   :  { %s891_s22 = smov 0   ;;  %s893_s23 = smov 0  }
   0x7 LB: > { %s908_s0 = sadd.s32 4294967295, %s842_s23   ;;  %s656_s24 = sadd.s32 4294967294, %s842_s23   ;;  %s842_s23 = sphi %s893_s23, %s1151_s23   ;;  %s838_s22 = sphi %s891_s22, %s1150_s22   ;;  %s834_s21 = sphi %s889_s21, %s1149_s21   ;;  %s830_s20 = sphi %s887_s20, %s1148_s20  }
   0x8   : > { %s912_s25 = sadd.s32 1, %s842_s23   ;;  %s76_s26 = sadd.s32 1, %s838_s22 }
   0x9   : > { %s73_s27 = ssub.s32 %s842_s23, %s912_s25  ;;  %p83_p0 = scmp.ne.s32.totalorder %s838_s22, %s834_s21 }
   0xa   : > { %p74_p1 = scmp.eq.s32.totalorder %s73_s27, 0  ;;  %p84_p2 = scmp.eq.s32.totalorder %s842_s23, 0 }
   0xb   : > { %p89_p3 = scmp.ne.s32.totalorder %s834_s21, %s830_s20  ;;  %p90_p4 = scmp.eq.s32.totalorder %s908_s0, 0 }
   0xc   : > { %s924_s28 = scalar_select %p74_p1, %s838_s22, %s76_s26  }
   0xd   : > { %p926_p5 = por %p84_p2, %p83_p0  ;;  %p930_p6 = por %p90_p4, %p89_p3 }
   0xe   : > { %p139_p7 = scmp.eq.s32.totalorder %s908_s0, 1  ;;  %p145_p8 = scmp.eq.s32.totalorder %s656_s24, 1 }
   0xf   : > { %p701_p10 = scmp.lt.s32.totalorder %s842_s23, 2  ;;  %s177_s8 = sand.u32 1, %s838_s22  }
  0x10   : > { %p937_p11 = por %p139_p7, %p83_p0  ;;  %p941_p12 = por %p145_p8, %p89_p3 }
  0x11   : > { %s678_s9 = sshll.u32 %s842_s23, 8  ;;  %s659_s10 = sshll.u32 %s177_s8, 4 }
  0x12   : > { %s1142_s6 = scalar_select %p937_p11, 1, 0 }
  0x13   : > { %s1143_s7 = scalar_select %p941_p12, 1, 0 }
  0x14   : > { %s950_s13 = scalar_lea.hbm %s1136_s3, %s678_s9  ;;  %s181_s14 = scalar_lea.vmem [#allocation4], %s659_s10 }
  0x15   : > { %s188_s15 = sshll.u32 %s181_s14, 4  ;;  %p954_p13 = pnand %p701_p10, %p926_p5  ;;  %s958_s15 = int_to_ptr.vmem [resolvable:$true] %s188_s15 }
  0x16   : > { %s960_s17 = scalar_lea.sflag [#allocation5], %s177_s8  ;;  %s746_s18 = scalar_lea.hbm %s950_s13, 256 }
  0x17   : > { %p747_p0 = scmp.ne.s32.totalorder %s950_s13, %s746_s18  ;;  %p748_p1 = pneg %p954_p13 }
  0x18   : > { %s751_s26 = scalar_lea.hbm %s1136_s3, 512  ;;  %p752_p4 = scmp.lt.u32.totalorder %s950_s13, %s1136_s3 }
  0x19   : > { %p749_p2 = pnand %p748_p1, %p747_p0  ;;  %p753_p5 = scmp.lt.u32.totalorder %s751_s26, %s746_s18 }
  0x1a   : > { %p755_p8 = scmp.lt.u32.totalorder %s746_s18, %s950_s13 }
  0x1b   : > { %p750_p3 = pneg %p749_p2  ;;  %p754_p7 = por %p753_p5, %p752_p4 }
  0x1d   : > { %p756_p10 = por %p755_p8, %p754_p7 }
  0x1f   : > { %p757_p9 = pnand %p756_p10, %p750_p3 }
  0x21   : > { %760 = shalt.err (!%p757_p9)
}
  0x22   : > { %s761_s8 = scalar_lea.vmem %s958_s15, 256  ;;  %s844_s9 = smov [#allocation4]  }
  0x23   : > { %p762_p0 = scmp.ne.s32.totalorder %s958_s15, %s761_s8  ;;  %s766_s10 = sshll.u32 %s844_s9, 4  ;;  %s767_s10 = int_to_ptr.vmem [resolvable:$false] %s766_s10 }
  0x24   : > { %s768_s11 = scalar_lea.vmem %s767_s10, 512  ;;  %p769_p11 = scmp.lt.s32.totalorder %s958_s15, %s767_s10 }
  0x25   : > { %p764_p2 = pnand %p762_p0, %p748_p1  ;;  %p770_p4 = scmp.lt.s32.totalorder %s768_s11, %s761_s8 }
  0x27   : > { %p765_p12 = pneg %p764_p2  ;;  %p771_p5 = por %p770_p4, %p769_p11 }
  0x29   : > { %p772_p7 = pnand %p771_p5, %p765_p12 }
  0x2b   : > { %775 = shalt.err (!%p772_p7)
}
  0x2c   : > { %s845_s12 = smov 128   ;;  %s846_s14 = smov 8  }
  0x2d   : > { %696 = dma.hbm_to_vmem [thread:$0]  (!%p954_p13), %s950_s13, 256, %s958_s15, %s960_s17, %s845_s12, %s845_s12, %s846_s14  }
  0x2e   : > { %p662_p9 = scmp.ge.s32.totalorder %s842_s23, 1  ;;  %p205_p1 = scmp.lt.s32.totalorder %s842_s23, 3 }
  0x30   : > { %p206_p3 = pnand %p662_p9, %p205_p1 }
  0x31   : > { %s991_s18 = sand.u32 (!%p206_p3), 1, %s834_s21  }
  0x32   : > { %209 = sbr.rel (%p206_p3) target bundleno = 1369 (0x559), region = 36  ;;  %s663_s19 = sshll.u32 (!%p206_p3), %s991_s18, 4 }
  0x33   : > { %s212_s24 = scalar_lea.sflag (!%p206_p3), [#allocation5], %s991_s18  ;;  %s995_s26 = scalar_lea.vmem (!%p206_p3), [#allocation4], %s663_s19 }
  0x39   : > { %821 = dma.done.wait (%p930_p6), %s212_s24, 256  }
  0x3a   : > { %823 = vsyncadd (%p930_p6), %s212_s24, 4294967040  ;;  %s665_s13 = sshll.u32 %s908_s0, 1  ;;  %v847_v0 = vmov 0   ;;  %v285_v3 = vlaneseq  ;;  %v1018_v6 = vld [vmem:[%s1134_s1] sm:$0x1]  ;;  %s848_s8 = smov 1  }
  0x3b   : > { %743 = vset.pattern.permute.xlu0 %v847_v0  ;;  %p251_p11 = scmp.lt.s32.totalorder %s665_s13, 3  ;;  %v849_v43 = vmov 0.0   ;;  %s850_s12 = smov 126  }
  0x3c   : > { %v1010_v4 = vshrl.u32 %v285_v3, 7  ;;  %v1022_v14 = vand.u32 127, %v285_v3  ;;  %s851_s14 = smov 2   ;;  %s433_s19 = sld [smem:[#allocation3]] }
  0x3d   : > { %s1153_s13 = smov (!%p251_p11, %s665_s13), 3  ;;  %s671_s24 = sshll.u32 %s908_s0, 4 }
  0x3e   : > { %s666_s15 = sshll.u32 %s1153_s13, 3  ;;  %v1013_v5 = vsub.s32 0, %v1010_v4  ;;  %s664_s17 = sshll.u32 %s991_s18, 3 }
  0x3f   : > { %s261_s27 = scalar_lea.vmem %s1137_s4, %s666_s15  ;;  %s254_s11 = scalar_lea.vmem %s1135_s2, %s666_s15 }
  0x40   : > { %v264_v1 = vld [vmem:[%s261_s27] sm:$0xff]  ;;  %v265_v2 = vld [vmem:[%s261_s27 + $0x8] sm:$0xff]  ;;  %v290_v7 = vrot.slane %v1018_v6, %v1013_v5  ;;  %s675_s30 = sshll.u32 %s908_s0, 7  ;;  %p1145_p12 = scmp.ne.s32.totalorder %s1142_s6, 0 }
  0x41   : > { %294 = vperm.xlu0 %743, %v264_v1   ;;  %v273_v49 = vld [vmem:[%s254_s11] sm:$0xff]  ;;  %v274_v54 = vld [vmem:[%s254_s11 + $0x8] sm:$0xff] }
  0x45   : > { %299 = vperm.xlu0 %743, %v265_v2   ;;  %v276_v2 = vld [vmem:[%s995_s26 + $0x8] sm:$0xff] }
  0x46   : > { %v278_v3 = vsub.f32 %v274_v54, %v276_v2 }
  0xc0   : > { %v295_v8 = vpop.permute.xlu0 %294 }
  0xc1   : > { %v302_v9 = vsub.f32 %v290_v7, %v295_v8 }
  0xc3   : > { %v304_v10 = vand.u32 2147483647, %v302_v9 }
  0xc4   : > { %v300_v11 = vpop.permute.xlu0 %299 }
  0xc5   : > { %v303_v12 = vsub.f32 %v290_v7, %v300_v11  ;;  %306 = vmin.xlane.f32.xlu1 %v304_v10 }
  0xc7   : > { %v305_v13 = vand.u32 2147483647, %v303_v12 }
  0xc9   : > { %308 = vmin.xlane.f32.xlu1 %v305_v13 }
 0x152   : > { %v307_v15 = vpop.xlane.xlu1 %306 }
 0x153   : > { %vm310_vm0 = vcmp.eq.f32.partialorder %v304_v10, %v307_v15 }
 0x154   : > { %v312_v16 = vsel %vm310_vm0, %v1022_v14, 128  ;;  %vm447_vm0 = vcmask 7168  }
 0x155   : > { %v315_v17 = vshra.s32 %v312_v16, 16  ;;  %v314_v23 = vand.u32 65535, %v312_v16 }
 0x156   : > { %v309_v18 = vpop.xlane.xlu1 %308 }
 0x157   : > { %vm311_vm1 = vcmp.eq.f32.partialorder %v305_v13, %v309_v18  ;;  %v317_v19 = vcvt.s32.f32 %v315_v17  ;;  %v316_v26 = vcvt.s32.f32 %v314_v23  ;;  %v275_v18 = vld [vmem:[%s995_s26] sm:$0xff]  ;;  %v430_v23 = vstv %s671_s24  ;;  %s852_s26 = smov 127  }
 0x158   : > { %v313_v20 = vsel %vm311_vm1, %v1022_v14, 128  ;;  %vm528_vm1 = vcmp.eq.s32.totalorder %v1022_v14, 0 }
 0x159   : > { %318 = vmin.xlane.f32.xlu0 %v317_v19  ;;  %v329_v21 = vshra.s32 %v313_v20, 16  ;;  %v328_v24 = vand.u32 65535, %v313_v20 }
 0x15b   : > { %v331_v22 = vcvt.s32.f32 %v329_v21  ;;  %v330_v29 = vcvt.s32.f32 %v328_v24  ;;  %v431_v24 = vadd.s32 %v430_v23, %v1010_v4 }
 0x15d   : > { %332 = vmin.xlane.f32.xlu1 %v331_v22 }
 0x1e6   : > { %v319_v25 = vpop.xlane.xlu0 %318 }
 0x1e7   : > { %vm320_vm2 = vcmp.eq.f32.partialorder %v317_v19, %v319_v25  ;;  %v325_v31 = vcvt.f32.s32 %v319_v25  ;;  %v277_v19 = vsub.f32 %v273_v49, %v275_v18  ;;  %v429_v25 = vadd.s32 8, %v1010_v4 }
 0x1e8   : > { %v321_v27 = vsel %vm320_vm2, %v316_v26, inf  ;;  %v434_v26 = vstv %s433_s19  ;;  %vm531_vm2 = vcmp.eq.s32.totalorder %v1022_v14, 1  ;;  %s853_s19 = smov [#allocation7]  }
 0x1e9   : > { %322 = vmin.xlane.f32.xlu1 %v321_v27  ;;  %v326_v34 = vshll.u32 %v325_v31, 16  ;;  %v279_v20 = vmul.f32 %v277_v19, %v277_v19  ;;  %vm435_vm12 = vcmp.lt.s32.totalorder %v431_v24, %v434_v26  ;;  %v432_v27 = vadd.s32 %v430_v23, %v429_v25  ;;  %s780_s24 = sshll.u32 %s853_s19, 4  ;;  %s781_s24 = int_to_ptr.vmem [resolvable:$false] %s780_s24 }
 0x1ea   : > { %v333_v28 = vpop.xlane.xlu1 %332 }
 0x1eb   : > { %vm334_vm3 = vcmp.eq.f32.partialorder %v331_v22, %v333_v28  ;;  %v339_v32 = vcvt.f32.s32 %v333_v28  ;;  %vm436_vm14 = vcmp.lt.s32.totalorder %v432_v27, %v434_v26 }
 0x1ec   : > { %v335_v30 = vsel %vm334_vm3, %v330_v29, inf  ;;  %v672_v29 = vsel %vm435_vm12, 1.0, %v849_v43  ;;  %vm535_vm3 = vcmp.eq.s32.totalorder %v1022_v14, 2 }
 0x1ed   : > { %336 = vmin.xlane.f32.xlu1 %v335_v30  ;;  %v340_v37 = vshll.u32 %v339_v32, 16 }
 0x1fe   : > { %267 = vrot.lane.b32.xlu1 %v1018_v6, %s848_s8 }
 0x276   : > { %v323_v33 = vpop.xlane.xlu1 %322 }
 0x277   : > { %v324_v35 = vcvt.f32.s32 %v323_v33 }
 0x279   : > { %v1028_v36 = vadd.s32 %v326_v34, %v324_v35  ;;  %v673_v34 = vsel %vm436_vm14, 1.0, %v849_v43 }
 0x27a   : > { %v337_v38 = vpop.xlane.xlu1 %336 }
 0x27b   : > { %v338_v39 = vcvt.f32.s32 %v337_v38  ;;  %v350_v40 = vadd.s32 1, %v1028_v36  ;;  %v669_v41 = vadd.s32 4294967295, %v1028_v36  ;;  %vm404_vm8 = vcmp.eq.s32.totalorder %v1028_v36, 127 }
 0x27c   : > { %vm342_vm10 = vcmp.eq.s32.totalorder %v1022_v14, %v1028_v36  ;;  %vm402_vm13 = vcmp.eq.s32.totalorder %v1028_v36, 0 }
 0x27d   : > { %v1037_v42 = vadd.s32 %v340_v37, %v338_v39  ;;  %vm352_vm4 = vcmp.eq.s32.totalorder %v1022_v14, %v350_v40  ;;  %vm358_vm5 = vcmp.eq.s32.totalorder %v1022_v14, %v669_v41  ;;  %v344_v21 = vsel %vm342_vm10, %v273_v49, 0.0 }
 0x27e   : > { %v354_v44 = vsel %vm352_vm4, 1.0, %v849_v43  ;;  %v360_v45 = vsel %vm358_vm5, 1.0, %v849_v43  ;;  %v268_v56 = vpop.permute.xlu1 %267  ;;  %vm539_vm4 = vcmp.eq.s32.totalorder %v1022_v14, 3  ;;  %vm543_vm5 = vcmp.eq.s32.totalorder %v1022_v14, 4 }
 0x27f   : > { %v362_v46 = vsub.f32 %v354_v44, %v360_v45  ;;  %v351_v47 = vadd.s32 1, %v1037_v42  ;;  %v670_v48 = vadd.s32 4294967295, %v1037_v42  ;;  %v270_v57 = vsub.f32 %v1018_v6, %v268_v56 }
 0x280   : > { %v280_v6 = vmul.f32 %v278_v3, %v278_v3  ;;  %vm405_vm9 = vcmp.eq.s32.totalorder %v1037_v42, 127  ;;  %vm343_vm11 = vcmp.eq.s32.totalorder %v1022_v14, %v1037_v42  ;;  %vm403_vm15 = vcmp.eq.s32.totalorder %v1037_v42, 0 }
 0x281   : > { %v364_v50 = vmul.f32 %v362_v46, %v273_v49  ;;  %vm353_vm6 = vcmp.eq.s32.totalorder %v1022_v14, %v351_v47  ;;  %vm359_vm7 = vcmp.eq.s32.totalorder %v1022_v14, %v670_v48  ;;  %744 = vrcp.f32 %v270_v57 }
 0x282   : > { %v355_v51 = vsel %vm353_vm6, 1.0, %v849_v43  ;;  %v361_v52 = vsel %vm359_vm7, 1.0, %v849_v43  ;;  %v345_v22 = vsel %vm343_vm11, %v274_v54, 0.0 }
 0x283   : > { %366 = vadd.xlane.f32.xlu1 %v364_v50  ;;  %v363_v53 = vsub.f32 %v355_v51, %v361_v52 }
 0x285   : > { %v365_v55 = vmul.f32 %v363_v53, %v274_v54 }
 0x287   : > { %368 = vadd.xlane.f32.xlu0 %v365_v55 }
 0x28b   : > { %v745_v58 = vpop.eup %744 }
 0x28c   : > { %v393_v59 = vrot.slane %v745_v58, %v1013_v5  ;;  %v370_v60 = vmul.f32 0.5, %v745_v58 }
 0x28e   : > { %v375_v61 = vrot.slane %v370_v60, %v1013_v5 }
 0x29d   : > { %381 = vrot.lane.b32.xlu0 %v273_v49, %s848_s8 }
 0x2a1   : > { %383 = vrot.lane.b32.xlu0 %v274_v54, %s848_s8  ;;  %s249_s8 = scalar_lea.vmem [#allocation7], %s664_s17 }
 0x2a2   : > { %s562_s9 = sshll.u32 %s249_s8, 4  ;;  %s1091_s9 = int_to_ptr.vmem [resolvable:$true] %s562_s9 }
 0x2a3   : > { %s776_s0 = scalar_lea.vmem %s1091_s9, 128  ;;  %p783_p10 = scmp.lt.s32.totalorder %s1091_s9, %s781_s24 }
 0x2a4   : > { %p777_p6 = scmp.ne.s32.totalorder %s1091_s9, %s776_s0 }
 0x2a5   : > { %397 = vrot.lane.b32.xlu0 %v393_v59, %s850_s12 }
 0x2a6   : > { %p778_p13 = pnand %p777_p6, %p1145_p12 }
 0x2a8   : > { %p779_p8 = pneg %p778_p13 }
 0x310   : > { %v367_v62 = vpop.xlane.xlu1 %366 }
 0x311   : > { %v377_v63 = vmul.f32 %v375_v61, %v367_v62 }
 0x313   : > { %408 = vrot.lane.b32.xlu0 %v377_v63, %s850_s12 }
 0x314   : > { %v369_v0 = vpop.xlane.xlu0 %368 }
 0x315   : > { %v378_v1 = vmul.f32 %v375_v61, %v369_v0 }
 0x317   : > { %410 = vrot.lane.b32.xlu1 %v378_v1, %s850_s12  ;;  %s1089_s12 = scalar_lea.hbm %s1138_s5, %s675_s30 }
 0x318   : > { %v382_v7 = vpop.permute.xlu0 %381 }
 0x319   : > { %v387_v10 = vsub.f32 %v273_v49, %v382_v7 }
 0x31b   : > { %v395_v28 = vmul.f32 %v393_v59, %v387_v10 }
 0x31c   : > { %v384_v8 = vpop.permute.xlu0 %383 }
 0x31d   : > { %v388_v5 = vsub.f32 %v274_v54, %v384_v8 }
 0x31f   : > { %v396_v33 = vmul.f32 %v393_v59, %v388_v5 }
 0x320   : > { %v398_v9 = vpop.permute.xlu0 %397 }
 0x321   : > { %v400_v11 = vmul.f32 %v398_v9, %v387_v10  ;;  %v401_v15 = vmul.f32 %v398_v9, %v388_v5 }
 0x33b   : > { %283 = vadd.xlane.f32.xlu1 %v280_v6 }
 0x385   : > { %v409_v12 = vpop.permute.xlu0 %408 }
 0x386   : > { %v414_v13 = vsel %vm404_vm8, %v400_v11, %v409_v12 }
 0x387   : > { %418 = vrot.lane.b32.xlu0 %v414_v13, %s851_s14 }
 0x389   : > { %v411_v16 = vpop.permute.xlu1 %410 }
 0x38a   : > { %v415_v17 = vsel %vm405_vm9, %v401_v15, %v411_v16 }
 0x38b   : > { %420 = vrot.lane.b32.xlu0 %v415_v17, %s851_s14  ;;  %s549_s14 = scalar_lea.sflag [#allocation6], %s991_s18 }
 0x3aa   : > { %281 = vadd.xlane.f32.xlu0 %v279_v20 }
 0x3ae   : > { %346 = vadd.xlane.f32.xlu0 %v344_v21 }
 0x3b2   : > { %348 = vadd.xlane.f32.xlu0 %v345_v22 }
 0x3c8   : > { %v284_v36 = vpop.xlane.xlu1 %283 }
 0x3c9   : > { %v446_v40 = vmul.f32 %v673_v34, %v284_v36 }
 0x3cb   : > { %v449_v45 = vsel %vm447_vm0, %v446_v40, 0.0 }
 0x3f9   : > { %v419_v30 = vpop.permute.xlu0 %418 }
 0x3fa   : > { %v424_v31 = vsel %vm402_vm13, %v395_v28, %v419_v30 }
 0x3fb   : > { %v443_v32 = vmul.f32 %v672_v29, %v424_v31 }
 0x3fd   : > { %488 = vrot.lane.b32.xlu0 %v443_v32, %s852_s26  ;;  %v421_v4 = vpop.permute.xlu0 %420  ;;  %v506_v39 = vmul.f32 %v443_v32, %v424_v31 }
 0x3fe   : > { %v425_v35 = vsel %vm403_vm15, %v396_v33, %v421_v4 }
 0x3ff   : > { %v444_v37 = vmul.f32 %v673_v34, %v425_v35 }
 0x401   : > { %v507_v38 = vmul.f32 %v444_v37, %v425_v35  ;;  %490 = vrot.lane.b32.xlu1 %v444_v37, %s852_s26 }
 0x403   : > { %512 = vrot.lane.b32.xlu0 %v507_v38, %s852_s26 }
 0x405   : > { %510 = vrot.lane.b32.xlu1 %v506_v39, %s852_s26  ;;  %s782_s26 = scalar_lea.vmem %s781_s24, 256 }
 0x406   : > { %p784_p0 = scmp.lt.s32.totalorder %s782_s26, %s776_s0 }
 0x408   : > { %p785_p2 = por %p784_p0, %p783_p10 }
 0x40a   : > { %p786_p4 = pnand %p785_p2, %p779_p8 }
 0x437   : > { %v282_v41 = vpop.xlane.xlu0 %281 }
 0x438   : > { %v445_v44 = vmul.f32 %v672_v29, %v282_v41 }
 0x43a   : > { %v448_v43 = vsel %vm447_vm0, %v445_v44, 0.0 }
 0x43b   : > { %v347_v46 = vpop.xlane.xlu0 %346  ;;  %v450_v47 = vadd.f32 %v449_v45, %v448_v43 }
 0x43c   : > { %v441_v42 = vmul.f32 %v672_v29, %v347_v46 }
 0x43d   : > { %451 = vadd.xlane.f32.xlu1 %v450_v47 }
 0x43e   : > { %v472_v50 = vmul.f32 %v441_v42, %v347_v46  ;;  %v460_v52 = vsel %vm447_vm0, %v441_v42, 0.0 }
 0x43f   : > { %v349_v48 = vpop.xlane.xlu0 %348 }
 0x440   : > { %v442_v49 = vmul.f32 %v673_v34, %v349_v48  ;;  %v474_v56 = vsel %vm447_vm0, %v472_v50, 0.0 }
 0x442   : > { %v473_v51 = vmul.f32 %v442_v49, %v349_v48  ;;  %v461_v53 = vsel %vm447_vm0, %v442_v49, 0.0 }
 0x443   : > { %v462_v54 = vadd.f32 %v461_v53, %v460_v52 }
 0x444   : > { %v475_v55 = vsel %vm447_vm0, %v473_v51, 0.0 }
 0x445   : > { %463 = vadd.xlane.f32.xlu0 %v462_v54  ;;  %v476_v57 = vadd.f32 %v475_v55, %v474_v56 }
 0x449   : > { %477 = vadd.xlane.f32.xlu0 %v476_v57 }
 0x46f   : > { %v489_v58 = vpop.permute.xlu0 %488 }
 0x470   : > { %v494_v60 = vsel %vm447_vm0, %v489_v58, 0.0 }
 0x473   : > { %v491_v59 = vpop.permute.xlu1 %490 }
 0x474   : > { %v495_v61 = vsel %vm447_vm0, %v491_v59, 0.0 }
 0x475   : > { %v513_v62 = vpop.permute.xlu0 %512  ;;  %v496_v63 = vadd.f32 %v495_v61, %v494_v60 }
 0x476   : > { %v517_v1 = vsel %vm447_vm0, %v513_v62, 0.0 }
 0x477   : > { %497 = vadd.xlane.f32.xlu1 %v496_v63  ;;  %v511_v0 = vpop.permute.xlu1 %510 }
 0x478   : > { %v516_v2 = vsel %vm447_vm0, %v511_v0, 0.0 }
 0x479   : > { %v518_v3 = vadd.f32 %v517_v1, %v516_v2 }
 0x47b   : > { %519 = vadd.xlane.f32.xlu0 %v518_v3 }
 0x4ca   : > { %v452_v6 = vpop.xlane.xlu1 %451 }
 0x4cb   : > { %v453_v7 = vrot.slane %v452_v6, 4 }
 0x4cd   : > { %v454_v8 = vadd.f32 %v453_v7, %v452_v6 }
 0x4cf   : > { %v455_v9 = vrot.slane %v454_v8, 2 }
 0x4d1   : > { %v456_v10 = vadd.f32 %v455_v9, %v454_v8 }
 0x4d2   : > { %v464_v11 = vpop.xlane.xlu0 %463 }
 0x4d3   : > { %v465_v12 = vrot.slane %v464_v11, 4  ;;  %v457_v5 = vrot.slane %v456_v10, 1 }
 0x4d5   : > { %v466_v13 = vadd.f32 %v465_v12, %v464_v11  ;;  %v458_v15 = vadd.f32 %v457_v5, %v456_v10 }
 0x4d6   : > { %v478_v16 = vpop.xlane.xlu0 %477 }
 0x4d7   : > { %v467_v17 = vrot.slane %v466_v13, 2  ;;  %v479_v18 = vrot.slane %v478_v16, 4  ;;  %679 = vpush %v458_v15 }
 0x4d9   : > { %v480_v19 = vadd.f32 %v479_v18, %v478_v16  ;;  %v468_v20 = vadd.f32 %v467_v17, %v466_v13 }
 0x4db   : > { %v481_v21 = vrot.slane %v480_v19, 2  ;;  %v469_v22 = vrot.slane %v468_v20, 1 }
 0x4dd   : > { %v470_v23 = vadd.f32 %v469_v22, %v468_v20  ;;  %v482_v24 = vadd.f32 %v481_v21, %v480_v19 }
 0x4df   : > { %681 = vpush %v470_v23  ;;  %v483_v25 = vrot.slane %v482_v24, 1 }
 0x4e1   : > { %v484_v26 = vadd.f32 %v483_v25, %v482_v24 }
 0x4e3   : > { %683 = vpush %v484_v26 }
 0x504   : > { %v498_v27 = vpop.xlane.xlu1 %497 }
 0x505   : > { %v499_v28 = vrot.slane %v498_v27, 4 }
 0x507   : > { %v500_v29 = vadd.f32 %v499_v28, %v498_v27 }
 0x508   : > { %v520_v30 = vpop.xlane.xlu0 %519  ;;  %s680_s13 = spop %679 }
 0x509   : > { %v501_v31 = vrot.slane %v500_v29, 2  ;;  %v521_v32 = vrot.slane %v520_v30, 4  ;;  %v529_v40 = vstv %s680_s13 }
 0x50a   : > { %v530_v45 = vsel %vm528_vm1, %v529_v40, 0.0 }
 0x50b   : > { %v502_v33 = vadd.f32 %v501_v31, %v500_v29  ;;  %v522_v34 = vadd.f32 %v521_v32, %v520_v30 }
 0x50d   : > { %v523_v4 = vrot.slane %v522_v34, 2  ;;  %v503_v35 = vrot.slane %v502_v33, 1 }
 0x50f   : > { %v524_v37 = vadd.f32 %v523_v4, %v522_v34  ;;  %v504_v38 = vadd.f32 %v503_v35, %v502_v33 }
 0x510   : > { %s682_s15 = spop %681 }
 0x511   : > { %685 = vpush %v504_v38  ;;  %v525_v39 = vrot.slane %v524_v37, 1  ;;  %v532_v41 = vstv %s682_s15 }
 0x512   : > { %v533_v43 = vsel %vm531_vm2, %v532_v41, 0.0 }
 0x513   : > { %v526_v36 = vadd.f32 %v525_v39, %v524_v37  ;;  %v534_v47 = vadd.f32 %v533_v43, %v530_v45 }
 0x514   : > { %s684_s16 = spop %683 }
 0x515   : > { %687 = vpush %v526_v36  ;;  %v536_v44 = vstv %s684_s16 }
 0x516   : > { %v537_v46 = vsel %vm535_vm3, %v536_v44, 0.0 }
 0x517   : > { %v538_v49 = vadd.f32 %v537_v46, %v534_v47 }
 0x542   : > { %s686_s27 = spop %685 }
 0x543   : > { %v540_v42 = vstv %s686_s27 }
 0x544   : > { %v541_v48 = vsel %vm539_vm4, %v540_v42, 0.0 }
 0x545   : > { %v542_v50 = vadd.f32 %v541_v48, %v538_v49 }
 0x546   : > { %s688_s29 = spop %687 }
 0x547   : > { %v544_v51 = vstv %s688_s29 }
 0x548   : > { %v545_v52 = vsel %vm543_vm5, %v544_v51, 0.0 }
 0x549   : > { %v546_v53 = vadd.f32 %v545_v52, %v542_v50 }
 0x54b   : > { %547 = vst [vmem:[%s249_s8] sm:$0xff] %v546_v53 }
 0x54c   : > { %789 = shalt.err (!%p786_p4)
}
 0x54d   : > { %s790_s18 = scalar_lea.hbm %s1089_s12, 128  ;;  %s794_s16 = scalar_lea.hbm %s1138_s5, 256 }
 0x54e   : > { %p791_p5 = scmp.ne.s32.totalorder %s1089_s12, %s790_s18  ;;  %p795_p1 = scmp.lt.u32.totalorder %s1089_s12, %s1138_s5 }
 0x54f   : > { %p796_p3 = scmp.lt.u32.totalorder %s794_s16, %s790_s18  ;;  %p798_p6 = scmp.lt.u32.totalorder %s790_s18, %s1089_s12 }
 0x550   : > { %p792_p7 = pnand %p791_p5, %p1145_p12 }
 0x551   : > { %p797_p11 = por %p796_p3, %p795_p1 }
 0x552   : > { %p793_p9 = pneg %p792_p7 }
 0x553   : > { %p799_p13 = por %p798_p6, %p797_p11 }
 0x555   : > { %p800_p8 = pnand %p799_p13, %p793_p9 }
 0x557   : > { %803 = shalt.err (!%p800_p8)
}
 0x558   : > { %691 = dma.vmem_to_hbm [thread:$0]  (%p1145_p12), %s1091_s9, 128, %s1089_s12, %s549_s14  }
 0x559 PF: > { %s574_s30 = sand.u32 1, %s830_s20   ;;  %p1146_p10 = scmp.ne.s32.totalorder %s1143_s7, 0 }
 0x55a   : > { %p1147_p0 = scmp.ge.s32.totalorder %s842_s23, 2  ;;  %s575_s29 = scalar_lea.sflag [#allocation6], %s574_s30 }
 0x55c   : > { %p698_p2 = pnand %p1147_p0, %p1146_p10 }
 0x55e   : > { %825 = dma.done.wait (!%p698_p2), %s575_s29, 128  }
 0x55f   : > { %827 = vsyncadd (!%p698_p2), %s575_s29, 4294967168  ;;  %p19_p4 = scmp.ge.s32.totalorder %s912_s25, 4   ;;  %s1148_s20 = smov %s834_s21 }
 0x560   : > { %s1149_s21 = smov %s838_s22  ;;  %s1150_s22 = smov %s924_s28 }
 0x561   : > { %s1151_s23 = smov %s912_s25  ;;  %21 = sbr.rel (!%p19_p4) target bundleno = 7 (0x7), region = 87 }
 0x568   :  { %580 = vsyncpa [#allocation5], 1 }
 0x569   :  { %582 = vsyncpa [#allocation5 + $0x1], 1 }
 0x56a   :  { %583 = vsyncpa [#allocation6], 1 }
 0x56b   :  { %585 = vsyncpa [#allocation6 + $0x1], 1 }

</bundles_post_ra>
